<compile_context>
chip_gen: v7x
topology: tpu7x:2x2x1
jax: 0.10.0
libtpu: 0.0.40
codegen_flags: <defaults>
</compile_context>

<pallas_src>
import numpy as np
import jax
import jax.numpy as jnp
from jax.experimental import pallas as pl
from jax.experimental.pallas import tpu as pltpu


def diffusion_kernel(hr_ref, noise_ref, lr_ref,          # (C, N) lane-dense images
                     sa_ref, sb_ref, sc_ref,             # (1, N) per-pixel scale vectors
                     acol_ref, bcol_ref,                 # (C, C, 1) fused 1x1-conv weights
                     beff_ref, temb_ref, semb_ref,       # (C, 1) bias / conditioning vectors
                     loss_ref):                          # (1, 1) SMEM scalar output
    sa = sa_ref[...]        # continuous_sqrt_alpha_cumprod, per pixel (per batch elem)
    sb = sb_ref[...]        # sqrt(1 - sa^2), precomputed in the wrapper
    sc = sc_ref[...]        # scaler, per pixel

    # conditioning: fused bias + noise-level / scaler embeddings, expressed as
    # (C,1) x (1,N) outer-product broadcasts on the VPU.
    recon = beff_ref[...] + temb_ref[...] * sa + semb_ref[...] * sc       # (C, N)

    # fused (encoder -> denoise) 1x1 convs.  K = C = 4, so the channel
    # contraction is done as broadcast-FMAs on the VPU instead of an MXU push.
    # q_sample is folded in row-by-row: x_noisy[k,:] = sa*hr[k,:] + sb*noise[k,:].
    C = lr_ref.shape[0]
    for k in range(C):                                   # static unroll (C = 4)
        lr_k = lr_ref[pl.ds(k, 1), :]                                         # (1, N)
        xn_k = sa * hr_ref[pl.ds(k, 1), :] + sb * noise_ref[pl.ds(k, 1), :]   # (1, N)
        recon = recon + acol_ref[k] * lr_k + bcol_ref[k] * xn_k               # (C,1)*(1,N)

    # loss: nn.L1Loss(reduction='sum')(noise, x_recon) -> scalar in SMEM
    loss_ref[0, 0] = jnp.sum(jnp.abs(noise_ref[...] - recon))


def _diffusion_p_losses(lr_up, hr, noise, sqrt_a, scaler, params):
    """lr_up / hr / noise are NCHW.  Returns the scalar p_losses L1-sum loss."""
    B, C, H, W = hr.shape
    HW = H * W
    N = B * HW
    w_enc, b_enc, w_dn1, w_dn2, b_dn, t_emb, s_emb = params

    # ---- lane-dense layout: channels-first, batch+spatial folded onto lanes ----
    def to_cf(x):                       # NCHW -> (C, B*H*W)
        return jnp.transpose(x, (1, 0, 2, 3)).reshape(C, N)

    lr_cf, hr_cf, noise_cf = to_cf(lr_up), to_cf(hr), to_cf(noise)

    # ---- fuse the encoder 1x1 conv into the denoise 1x1 conv (exact) ----
    #   x_con @ w_dn1 = lr @ (w_enc @ w_dn1) + b_enc @ w_dn1
    w_fused = w_enc @ w_dn1                               # acts on lr
    acol = w_fused.reshape(C, C, 1)                       # acol[k][j,0] = w_fused[k, j]
    bcol = w_dn2.reshape(C, C, 1)                         # bcol[k][j,0] = w_dn2[k, j]
    b_eff = (b_enc @ w_dn1 + b_dn).reshape(C, 1)
    t_emb_c = t_emb.reshape(C, 1)
    s_emb_c = s_emb.reshape(C, 1)

    # ---- per-pixel (per-lane) noise-level / scaler vectors, sqrt precomputed ----
    sa_vec = jnp.repeat(sqrt_a.astype(jnp.float32), HW).reshape(1, N)
    sb_vec = jnp.sqrt(jnp.maximum(0.0, 1.0 - sa_vec * sa_vec))
    sc_vec = jnp.repeat(scaler.astype(jnp.float32), HW).reshape(1, N)

    loss = pl.pallas_call(
        diffusion_kernel,
        out_shape=jax.ShapeDtypeStruct((1, 1), jnp.float32),
        in_specs=[pl.BlockSpec(memory_space=pltpu.MemorySpace.VMEM)
                  for _ in range(11)],
        out_specs=pl.BlockSpec(memory_space=pltpu.MemorySpace.SMEM),
    )(hr_cf, noise_cf, lr_cf, sa_vec, sb_vec, sc_vec,
      acol, bcol, b_eff, t_emb_c, s_emb_c)
    return loss[0, 0]


# jit the wrapper so layout prep + weight fusion compile into one XLA program
diffusion_p_losses = jax.jit(_diffusion_p_losses)


if __name__ == "__main__":
    # --- sizes (small, consistent with the module's forward) ---
    B, C = 2, 4
    Hlr = Wlr = 8
    H = W = 16

    # --- noise schedule (set_new_noise_schedule) ---
    num_timesteps = 2000
    betas = np.linspace(1e-06, 0.01, num_timesteps, dtype=np.float64)
    alphas = 1.0 - betas
    alphas_cumprod = np.cumprod(alphas, axis=0)
    sqrt_alphas_cumprod_prev = np.sqrt(np.append(1.0, alphas_cumprod))

    # --- deterministic inputs / parameters ---
    key = jax.random.PRNGKey(0)
    (k_lr, k_hr, k_noise, k_t, k_sa,
     k_w_enc, k_b_enc, k_w_dn1, k_w_dn2, k_b_dn, k_t_emb, k_s_emb) = jax.random.split(key, 12)

    lr = jax.random.normal(k_lr, (B, C, Hlr, Wlr), jnp.float32)     # x_in['lr']
    hr = jax.random.normal(k_hr, (B, C, H, W), jnp.float32)         # x_in['hr']
    noise = jax.random.normal(k_noise, (B, C, H, W), jnp.float32)
    scaler = jnp.full((B,), float(H) / float(Hlr), jnp.float32)     # x_in['scaler']

    # t ~ randint(1, num_timesteps+1); continuous sqrt-alpha ~ U(prev[t-1], prev[t])
    t = int(jax.random.randint(k_t, (), 1, num_timesteps + 1))
    lo = float(sqrt_alphas_cumprod_prev[t - 1])
    hi = float(sqrt_alphas_cumprod_prev[t])
    sqrt_a = jax.random.uniform(k_sa, (B,), jnp.float32, minval=lo, maxval=hi)

    # synthetic encoder / denoise_fn parameters (1x1 convs + conditioning vecs)
    s = 0.1
    w_enc = s * jax.random.normal(k_w_enc, (C, C), jnp.float32)
    b_enc = s * jax.random.normal(k_b_enc, (1, C), jnp.float32)
    w_dn1 = s * jax.random.normal(k_w_dn1, (C, C), jnp.float32)   # acts on x_con
    w_dn2 = s * jax.random.normal(k_w_dn2, (C, C), jnp.float32)   # acts on x_noisy
    b_dn = s * jax.random.normal(k_b_dn, (1, C), jnp.float32)
    t_emb = s * jax.random.normal(k_t_emb, (1, C), jnp.float32)   # noise-level cond
    s_emb = s * jax.random.normal(k_s_emb, (1, C), jnp.float32)   # scaler cond
    params = (w_enc, b_enc, w_dn1, w_dn2, b_dn, t_emb, s_emb)

    # gen_feat glue: nearest-neighbor upsample of LR to HR spatial shape (plain JAX)
    lr_up = jnp.repeat(jnp.repeat(lr, H // Hlr, axis=2), W // Wlr, axis=3)

    # --- run Pallas kernel ---
    loss = diffusion_p_losses(lr_up, hr, noise, sqrt_a, scaler, params)
    loss = jax.block_until_ready(loss)

    # --- plain-JAX reference for sanity (unfused, channels-last, as in the spec) ---
    def nchw_to_flat_cl(x):
        b_, c_, h_, w_ = x.shape
        return jnp.transpose(x, (0, 2, 3, 1)).reshape(b_, h_ * w_, c_)

    def reference():
        lr_up_f = nchw_to_flat_cl(lr_up)
        hr_f = nchw_to_flat_cl(hr)
        noise_f = nchw_to_flat_cl(noise)
        x_con = lr_up_f @ w_enc + b_enc
        sa = sqrt_a[:, None, None]
        x_noisy = sa * hr_f + jnp.sqrt(1.0 - sa ** 2) * noise_f
        x_recon = (x_con @ w_dn1 + x_noisy @ w_dn2 + b_dn
                   + sa * t_emb + scaler[:, None, None] * s_emb)
        return jnp.sum(jnp.abs(noise_f - x_recon))

    ref = jax.block_until_ready(reference())
    assert np.allclose(np.array(loss), np.array(ref), rtol=1e-4, atol=1e-2), (loss, ref)

    # TODO(synk): p_sample_loop / generalized_steps (sampling paths) are inference-only
    # loops over an external denoise_fn and are not part of the forward pass.
    print("KERNEL_OK")
</pallas_src>

<mosaic_0001>
module attributes {stable_mosaic.version = 11 : i64} {
  func.func @diffusion_kernel(%arg0: memref<4x512xf32, #tpu.memory_space<vmem>>, %arg1: memref<4x512xf32, #tpu.memory_space<vmem>>, %arg2: memref<4x512xf32, #tpu.memory_space<vmem>>, %arg3: memref<1x512xf32, #tpu.memory_space<vmem>>, %arg4: memref<1x512xf32, #tpu.memory_space<vmem>>, %arg5: memref<1x512xf32, #tpu.memory_space<vmem>>, %arg6: memref<4x4x1xf32, #tpu.memory_space<vmem>>, %arg7: memref<4x4x1xf32, #tpu.memory_space<vmem>>, %arg8: memref<4x1xf32, #tpu.memory_space<vmem>>, %arg9: memref<4x1xf32, #tpu.memory_space<vmem>>, %arg10: memref<4x1xf32, #tpu.memory_space<vmem>>, %arg11: memref<1x1xf32, #tpu.memory_space<smem>>) attributes {dimension_semantics = [], scalar_prefetch = 0 : i64, scratch_operands = 0 : i64, tpu.core_type = #tpu.core_type<tc>} {
    %c0 = arith.constant 0 : index
    %c0_0 = arith.constant 0 : index
    %0 = vector.load %arg3[%c0, %c0_0] : memref<1x512xf32, #tpu.memory_space<vmem>>, vector<1x512xf32>
    %c0_1 = arith.constant 0 : index
    %c0_2 = arith.constant 0 : index
    %1 = vector.load %arg4[%c0_1, %c0_2] : memref<1x512xf32, #tpu.memory_space<vmem>>, vector<1x512xf32>
    %c0_3 = arith.constant 0 : index
    %c0_4 = arith.constant 0 : index
    %2 = vector.load %arg5[%c0_3, %c0_4] : memref<1x512xf32, #tpu.memory_space<vmem>>, vector<1x512xf32>
    %c0_5 = arith.constant 0 : index
    %c0_6 = arith.constant 0 : index
    %3 = vector.load %arg8[%c0_5, %c0_6] : memref<4x1xf32, #tpu.memory_space<vmem>>, vector<4x1xf32>
    %c0_7 = arith.constant 0 : index
    %c0_8 = arith.constant 0 : index
    %4 = vector.load %arg9[%c0_7, %c0_8] : memref<4x1xf32, #tpu.memory_space<vmem>>, vector<4x1xf32>
    %5 = vector.broadcast %4 : vector<4x1xf32> to vector<4x512xf32>
    %6 = vector.broadcast %0 : vector<1x512xf32> to vector<4x512xf32>
    %7 = arith.mulf %5, %6 : vector<4x512xf32>
    %8 = vector.broadcast %3 : vector<4x1xf32> to vector<4x512xf32>
    %9 = arith.addf %8, %7 : vector<4x512xf32>
    %c0_9 = arith.constant 0 : index
    %c0_10 = arith.constant 0 : index
    %10 = vector.load %arg10[%c0_9, %c0_10] : memref<4x1xf32, #tpu.memory_space<vmem>>, vector<4x1xf32>
    %11 = vector.broadcast %10 : vector<4x1xf32> to vector<4x512xf32>
    %12 = vector.broadcast %2 : vector<1x512xf32> to vector<4x512xf32>
    %13 = arith.mulf %11, %12 : vector<4x512xf32>
    %14 = arith.addf %9, %13 : vector<4x512xf32>
    %c0_11 = arith.constant 0 : index
    %c0_12 = arith.constant 0 : index
    %15 = vector.load %arg2[%c0_11, %c0_12] : memref<4x512xf32, #tpu.memory_space<vmem>>, vector<1x512xf32>
    %c0_13 = arith.constant 0 : index
    %c0_14 = arith.constant 0 : index
    %16 = vector.load %arg0[%c0_13, %c0_14] : memref<4x512xf32, #tpu.memory_space<vmem>>, vector<1x512xf32>
    %17 = arith.mulf %0, %16 : vector<1x512xf32>
    %c0_15 = arith.constant 0 : index
    %c0_16 = arith.constant 0 : index
    %18 = vector.load %arg1[%c0_15, %c0_16] : memref<4x512xf32, #tpu.memory_space<vmem>>, vector<1x512xf32>
    %19 = arith.mulf %1, %18 : vector<1x512xf32>
    %20 = arith.addf %17, %19 : vector<1x512xf32>
    %c0_17 = arith.constant 0 : index
    %c0_18 = arith.constant 0 : index
    %c0_19 = arith.constant 0 : index
    %21 = vector.load %arg6[%c0_17, %c0_18, %c0_19] : memref<4x4x1xf32, #tpu.memory_space<vmem>>, vector<1x4x1xf32>
    %22 = vector.shape_cast %21 : vector<1x4x1xf32> to vector<4x1xf32>
    %23 = vector.broadcast %22 : vector<4x1xf32> to vector<4x512xf32>
    %24 = vector.broadcast %15 : vector<1x512xf32> to vector<4x512xf32>
    %25 = arith.mulf %23, %24 : vector<4x512xf32>
    %26 = arith.addf %14, %25 : vector<4x512xf32>
    %c0_20 = arith.constant 0 : index
    %c0_21 = arith.constant 0 : index
    %c0_22 = arith.constant 0 : index
    %27 = vector.load %arg7[%c0_20, %c0_21, %c0_22] : memref<4x4x1xf32, #tpu.memory_space<vmem>>, vector<1x4x1xf32>
    %28 = vector.shape_cast %27 : vector<1x4x1xf32> to vector<4x1xf32>
    %29 = vector.broadcast %28 : vector<4x1xf32> to vector<4x512xf32>
    %30 = vector.broadcast %20 : vector<1x512xf32> to vector<4x512xf32>
    %31 = arith.mulf %29, %30 : vector<4x512xf32>
    %32 = arith.addf %26, %31 : vector<4x512xf32>
    %c1 = arith.constant 1 : index
    %c0_23 = arith.constant 0 : index
    %33 = vector.load %arg2[%c1, %c0_23] : memref<4x512xf32, #tpu.memory_space<vmem>>, vector<1x512xf32>
    %c1_24 = arith.constant 1 : index
    %c0_25 = arith.constant 0 : index
    %34 = vector.load %arg0[%c1_24, %c0_25] : memref<4x512xf32, #tpu.memory_space<vmem>>, vector<1x512xf32>
    %35 = arith.mulf %0, %34 : vector<1x512xf32>
    %c1_26 = arith.constant 1 : index
    %c0_27 = arith.constant 0 : index
    %36 = vector.load %arg1[%c1_26, %c0_27] : memref<4x512xf32, #tpu.memory_space<vmem>>, vector<1x512xf32>
    %37 = arith.mulf %1, %36 : vector<1x512xf32>
    %38 = arith.addf %35, %37 : vector<1x512xf32>
    %c1_28 = arith.constant 1 : index
    %c0_29 = arith.constant 0 : index
    %c0_30 = arith.constant 0 : index
    %39 = vector.load %arg6[%c1_28, %c0_29, %c0_30] : memref<4x4x1xf32, #tpu.memory_space<vmem>>, vector<1x4x1xf32>
    %40 = vector.shape_cast %39 : vector<1x4x1xf32> to vector<4x1xf32>
    %41 = vector.broadcast %40 : vector<4x1xf32> to vector<4x512xf32>
    %42 = vector.broadcast %33 : vector<1x512xf32> to vector<4x512xf32>
    %43 = arith.mulf %41, %42 : vector<4x512xf32>
    %44 = arith.addf %32, %43 : vector<4x512xf32>
    %c1_31 = arith.constant 1 : index
    %c0_32 = arith.constant 0 : index
    %c0_33 = arith.constant 0 : index
    %45 = vector.load %arg7[%c1_31, %c0_32, %c0_33] : memref<4x4x1xf32, #tpu.memory_space<vmem>>, vector<1x4x1xf32>
    %46 = vector.shape_cast %45 : vector<1x4x1xf32> to vector<4x1xf32>
    %47 = vector.broadcast %46 : vector<4x1xf32> to vector<4x512xf32>
    %48 = vector.broadcast %38 : vector<1x512xf32> to vector<4x512xf32>
    %49 = arith.mulf %47, %48 : vector<4x512xf32>
    %50 = arith.addf %44, %49 : vector<4x512xf32>
    %c2 = arith.constant 2 : index
    %c0_34 = arith.constant 0 : index
    %51 = vector.load %arg2[%c2, %c0_34] : memref<4x512xf32, #tpu.memory_space<vmem>>, vector<1x512xf32>
    %c2_35 = arith.constant 2 : index
    %c0_36 = arith.constant 0 : index
    %52 = vector.load %arg0[%c2_35, %c0_36] : memref<4x512xf32, #tpu.memory_space<vmem>>, vector<1x512xf32>
    %53 = arith.mulf %0, %52 : vector<1x512xf32>
    %c2_37 = arith.constant 2 : index
    %c0_38 = arith.constant 0 : index
    %54 = vector.load %arg1[%c2_37, %c0_38] : memref<4x512xf32, #tpu.memory_space<vmem>>, vector<1x512xf32>
    %55 = arith.mulf %1, %54 : vector<1x512xf32>
    %56 = arith.addf %53, %55 : vector<1x512xf32>
    %c2_39 = arith.constant 2 : index
    %c0_40 = arith.constant 0 : index
    %c0_41 = arith.constant 0 : index
    %57 = vector.load %arg6[%c2_39, %c0_40, %c0_41] : memref<4x4x1xf32, #tpu.memory_space<vmem>>, vector<1x4x1xf32>
    %58 = vector.shape_cast %57 : vector<1x4x1xf32> to vector<4x1xf32>
    %59 = vector.broadcast %58 : vector<4x1xf32> to vector<4x512xf32>
    %60 = vector.broadcast %51 : vector<1x512xf32> to vector<4x512xf32>
    %61 = arith.mulf %59, %60 : vector<4x512xf32>
    %62 = arith.addf %50, %61 : vector<4x512xf32>
    %c2_42 = arith.constant 2 : index
    %c0_43 = arith.constant 0 : index
    %c0_44 = arith.constant 0 : index
    %63 = vector.load %arg7[%c2_42, %c0_43, %c0_44] : memref<4x4x1xf32, #tpu.memory_space<vmem>>, vector<1x4x1xf32>
    %64 = vector.shape_cast %63 : vector<1x4x1xf32> to vector<4x1xf32>
    %65 = vector.broadcast %64 : vector<4x1xf32> to vector<4x512xf32>
    %66 = vector.broadcast %56 : vector<1x512xf32> to vector<4x512xf32>
    %67 = arith.mulf %65, %66 : vector<4x512xf32>
    %68 = arith.addf %62, %67 : vector<4x512xf32>
    %c3 = arith.constant 3 : index
    %c0_45 = arith.constant 0 : index
    %69 = vector.load %arg2[%c3, %c0_45] : memref<4x512xf32, #tpu.memory_space<vmem>>, vector<1x512xf32>
    %c3_46 = arith.constant 3 : index
    %c0_47 = arith.constant 0 : index
    %70 = vector.load %arg0[%c3_46, %c0_47] : memref<4x512xf32, #tpu.memory_space<vmem>>, vector<1x512xf32>
    %71 = arith.mulf %0, %70 : vector<1x512xf32>
    %c3_48 = arith.constant 3 : index
    %c0_49 = arith.constant 0 : index
    %72 = vector.load %arg1[%c3_48, %c0_49] : memref<4x512xf32, #tpu.memory_space<vmem>>, vector<1x512xf32>
    %73 = arith.mulf %1, %72 : vector<1x512xf32>
    %74 = arith.addf %71, %73 : vector<1x512xf32>
    %c3_50 = arith.constant 3 : index
    %c0_51 = arith.constant 0 : index
    %c0_52 = arith.constant 0 : index
    %75 = vector.load %arg6[%c3_50, %c0_51, %c0_52] : memref<4x4x1xf32, #tpu.memory_space<vmem>>, vector<1x4x1xf32>
    %76 = vector.shape_cast %75 : vector<1x4x1xf32> to vector<4x1xf32>
    %77 = vector.broadcast %76 : vector<4x1xf32> to vector<4x512xf32>
    %78 = vector.broadcast %69 : vector<1x512xf32> to vector<4x512xf32>
    %79 = arith.mulf %77, %78 : vector<4x512xf32>
    %80 = arith.addf %68, %79 : vector<4x512xf32>
    %c3_53 = arith.constant 3 : index
    %c0_54 = arith.constant 0 : index
    %c0_55 = arith.constant 0 : index
    %81 = vector.load %arg7[%c3_53, %c0_54, %c0_55] : memref<4x4x1xf32, #tpu.memory_space<vmem>>, vector<1x4x1xf32>
    %82 = vector.shape_cast %81 : vector<1x4x1xf32> to vector<4x1xf32>
    %83 = vector.broadcast %82 : vector<4x1xf32> to vector<4x512xf32>
    %84 = vector.broadcast %74 : vector<1x512xf32> to vector<4x512xf32>
    %85 = arith.mulf %83, %84 : vector<4x512xf32>
    %86 = arith.addf %80, %85 : vector<4x512xf32>
    %c0_56 = arith.constant 0 : index
    %c0_57 = arith.constant 0 : index
    %87 = vector.load %arg1[%c0_56, %c0_57] : memref<4x512xf32, #tpu.memory_space<vmem>>, vector<4x512xf32>
    %88 = arith.subf %87, %86 : vector<4x512xf32>
    %89 = math.absf %88 : vector<4x512xf32>
    %90 = vector.shape_cast %89 : vector<4x512xf32> to vector<1x4x512xf32>
    %cst = arith.constant dense<0.000000e+00> : vector<1xf32>
    %91 = vector.multi_reduction <add>, %90, %cst [1, 2] : vector<1x4x512xf32> to vector<1xf32>
    %92 = vector.shape_cast %91 : vector<1xf32> to vector<1x1x1xf32>
    %93 = vector.extract %92[0, 0, 0] : f32 from vector<1x1x1xf32>
    %c0_58 = arith.constant 0 : index
    %c0_59 = arith.constant 0 : index
    %94 = memref.load %arg11[%c0_58, %c0_59] : memref<1x1xf32, #tpu.memory_space<smem>>
    memref.store %93, %arg11[%c0_58, %c0_59] : memref<1x1xf32, #tpu.memory_space<smem>>
    return
  }
}

</mosaic_0001>

<bundles_post_ra>
// kernel: _diffusion_p_losses.1
= control target key start
LH: loop header
LB: loop body
LE: loop exit
PB: predicated region body
PF: predicated region fallthrough
CT: control target
= control target key end

     0   :  { %v522_v2 = vmov 0   ;;  %s852_s0 = inlined_call_operand.vmem [shape: f32[4,512], index: 0, kind: input, shape index: {}]   ;;  %s853_s1 = inlined_call_operand.vmem [shape: f32[4,512], index: 1, kind: input, shape index: {}]   ;;  %s854_s2 = inlined_call_operand.vmem [shape: f32[4,512], index: 2, kind: input, shape index: {}]   ;;  %s855_s3 = inlined_call_operand.vmem [shape: f32[1,512], index: 3, kind: input, shape index: {}]   ;;  %s856_s4 = inlined_call_operand.vmem [shape: f32[1,512], index: 4, kind: input, shape index: {}]   ;;  %s857_s5 = inlined_call_operand.vmem [shape: f32[1,512], index: 5, kind: input, shape index: {}]   ;;  %s858_s6 = inlined_call_operand.vmem [shape: f32[4,4,1], index: 6, kind: input, shape index: {}]   ;;  %s859_s7 = inlined_call_operand.vmem [shape: f32[4,4,1], index: 7, kind: input, shape index: {}]   ;;  %s860_s8 = inlined_call_operand.vmem [shape: f32[4,1], index: 8, kind: input, shape index: {}]   ;;  %s861_s9 = inlined_call_operand.vmem [shape: f32[4,1], index: 9, kind: input, shape index: {}]   ;;  %s862_s10 = inlined_call_operand.vmem [shape: f32[4,1], index: 10, kind: input, shape index: {}]   ;;  %s863_s11 = inlined_call_operand.hbm [shape: f32[1,1], index: 11, kind: output, shape index: {}]  }
   0x1   :  { %v83_v0 = vld [vmem:[%s862_s10] sm:$0xf]  ;;  %509 = vset.pattern.permute.xlu1 %v522_v2  ;;  %508 = vset.pattern.permute.xlu0 %v522_v2  ;;  %v492_v5 = vld [vmem:[%s858_s6 + $0x4] sm:$0xf] }
   0x2   :  { %v43_v1 = vld [vmem:[%s861_s9] sm:$0xf]  ;;  %86 = vperm.xlu1 %509, %v83_v0  }
   0x3   :  { %46 = vperm.xlu0 %508, %v43_v1   ;;  %v124_v3 = vld [vmem:[%s858_s6] sm:$0xf] }
   0x4   :  { %v42_v4 = vld [vmem:[%s860_s8] sm:$0xf] }
   0x5   :  { %v159_v6 = vld [vmem:[%s859_s7] sm:$0xf] }
   0x6   :  { %127 = vperm.xlu1 %509, %v124_v3  }
   0x7   :  { %76 = vperm.xlu0 %508, %v42_v4  }
   0x8   :  { %16 = vsyncpa [#allocation3], 0  ;;  %v497_v7 = vld [vmem:[%s858_s6 + $0x8] sm:$0xf]  ;;  %v493_v8 = vld [vmem:[%s859_s7 + $0x4] sm:$0xf]  ;;  %v50_v12 = vlaneseq }
   0x9   :  { %v502_v9 = vld [vmem:[%s858_s6 + $0xc] sm:$0xf]  ;;  %v498_v10 = vld [vmem:[%s859_s7 + $0x8] sm:$0xf]  ;;  %v623_v15 = vld [vmem:[%s857_s5] sm:$0xf] }
   0xa   :  { %207 = vperm.xlu1 %509, %v492_v5   ;;  %v503_v11 = vld [vmem:[%s859_s7 + $0xc] sm:$0xf]  ;;  %v51_v13 = vshrl.u32 %v50_v12, 7  ;;  %v40_v17 = vld [vmem:[%s856_s4] sm:$0xf]  ;;  %vm457_vm0 = vcmask 1043456  }
   0xb   :  { %162 = vperm.xlu0 %508, %v159_v6   ;;  %v119_v14 = vld [vmem:[%s852_s0] ss:$4 sm:$0xf]  ;;  %v490_v18 = vld [vmem:[%s852_s0 + $0x1] ss:$4 sm:$0xf] }
   0xc   :  { %v121_v16 = vld [vmem:[%s853_s1] ss:$4 sm:$0xf]  ;;  %v491_v19 = vld [vmem:[%s853_s1 + $0x1] ss:$4 sm:$0xf] }
   0xd   :  { %v637_v20 = vsub.s32 0, %v51_v13  ;;  %v639_v21 = vsub.s32 1, %v51_v13  ;;  %v641_v22 = vsub.s32 2, %v51_v13  ;;  %v643_v23 = vsub.s32 3, %v51_v13  ;;  %v648_v24 = vld [vmem:[%s855_s3] sm:$0xf] }
   0xe   :  { %288 = vperm.xlu1 %509, %v497_v7   ;;  %v120_v25 = vmul.f32 %v119_v14, %v648_v24  ;;  %v122_v26 = vmul.f32 %v121_v16, %v40_v17  ;;  %v495_v27 = vld [vmem:[%s852_s0 + $0x2] ss:$4 sm:$0xf]  ;;  %v660_v29 = vld [vmem:[%s854_s2] ss:$4 sm:$0xf]  ;;  %v198_v30 = vmul.f32 %v490_v18, %v648_v24  ;;  %v201_v31 = vmul.f32 %v491_v19, %v40_v17 }
   0xf   :  { %243 = vperm.xlu0 %508, %v493_v8   ;;  %v496_v28 = vld [vmem:[%s853_s1 + $0x2] ss:$4 sm:$0xf]  ;;  %v93_v32 = vrot.slane %v623_v15, %v637_v20  ;;  %v97_v33 = vrot.slane %v623_v15, %v639_v21  ;;  %v101_v34 = vrot.slane %v623_v15, %v641_v22  ;;  %v105_v35 = vrot.slane %v623_v15, %v643_v23  ;;  %v678_v38 = vld [vmem:[%s854_s2 + $0x1] ss:$4 sm:$0xf] }
  0x10   :  { %v53_v36 = vrot.slane %v648_v24, %v637_v20  ;;  %v57_v37 = vrot.slane %v648_v24, %v639_v21  ;;  %v279_v39 = vmul.f32 %v495_v27, %v648_v24  ;;  %v282_v40 = vmul.f32 %v496_v28, %v40_v17  ;;  %v692_v45 = vld [vmem:[%s854_s2 + $0x2] ss:$4 sm:$0xf]  ;;  %v500_v50 = vld [vmem:[%s852_s0 + $0x3] ss:$4 sm:$0xf] }
  0x11   :  { %v61_v41 = vrot.slane %v648_v24, %v641_v22  ;;  %v65_v42 = vrot.slane %v648_v24, %v643_v23  ;;  %v134_v43 = vrot.slane %v660_v29, %v637_v20  ;;  %v687_v44 = vadd.f32 %v122_v26, %v120_v25  ;;  %v501_v51 = vld [vmem:[%s853_s1 + $0x3] ss:$4 sm:$0xf]  ;;  %s510_s23 = scalar_lea.hbm %s863_s11, 16 }
  0x12   :  { %369 = vperm.xlu1 %509, %v502_v9   ;;  %v138_v46 = vrot.slane %v660_v29, %v639_v21  ;;  %v142_v47 = vrot.slane %v660_v29, %v641_v22  ;;  %v146_v48 = vrot.slane %v660_v29, %v643_v23  ;;  %v700_v49 = vadd.f32 %v201_v31, %v198_v30  ;;  %v725_v59 = vld [vmem:[%s854_s2 + $0x3] ss:$4 sm:$0xf]  ;;  %p511_p0 = scmp.ne.s32.totalorder %s863_s11, %s510_s23  ;;  %p514_p1 = scmp.lt.u32.totalorder %s510_s23, %s863_s11 }
  0x13   :  { %324 = vperm.xlu0 %508, %v498_v10   ;;  %v214_v52 = vrot.slane %v678_v38, %v637_v20  ;;  %v218_v53 = vrot.slane %v678_v38, %v639_v21  ;;  %v222_v54 = vrot.slane %v678_v38, %v641_v22  ;;  %v226_v55 = vrot.slane %v678_v38, %v643_v23 }
  0x14   :  { %v295_v56 = vrot.slane %v692_v45, %v637_v20  ;;  %v299_v57 = vrot.slane %v692_v45, %v639_v21  ;;  %v303_v58 = vrot.slane %v692_v45, %v641_v22  ;;  %v727_v60 = vadd.f32 %v282_v40, %v279_v39  ;;  %p516_p2 = pnand %p514_p1, %p511_p0 }
  0x15   :  { %v169_v61 = vrot.slane %v687_v44, %v637_v20  ;;  %v307_v62 = vrot.slane %v692_v45, %v643_v23  ;;  %v360_v63 = vmul.f32 %v500_v50, %v648_v24  ;;  %v363_v0 = vmul.f32 %v501_v51, %v40_v17 }
  0x16   :  { %v173_v3 = vrot.slane %v687_v44, %v639_v21  ;;  %v177_v4 = vrot.slane %v687_v44, %v641_v22  ;;  %v181_v5 = vrot.slane %v687_v44, %v643_v23  ;;  %v250_v6 = vrot.slane %v700_v49, %v637_v20 }
  0x17   :  { %405 = vperm.xlu0 %508, %v503_v11   ;;  %v254_v7 = vrot.slane %v700_v49, %v639_v21  ;;  %v258_v8 = vrot.slane %v700_v49, %v641_v22  ;;  %v262_v9 = vrot.slane %v700_v49, %v643_v23  ;;  %v376_v10 = vrot.slane %v725_v59, %v637_v20 }
  0x18   :  { %v380_v11 = vrot.slane %v725_v59, %v639_v21  ;;  %v384_v12 = vrot.slane %v725_v59, %v641_v22  ;;  %v388_v13 = vrot.slane %v725_v59, %v643_v23  ;;  %v764_v18 = vadd.f32 %v363_v0, %v360_v63 }
  0x19   :  { %v867_v59 = vrot.slane %v727_v60, %v643_v23 }
  0x81   :  { %v87_v1 = vpop.permute.xlu1 %86 }
  0x82   :  { %v47_v2 = vpop.permute.xlu0 %46  ;;  %v110_v29 = vmul.f32 %v93_v32, %v87_v1  ;;  %v111_v30 = vmul.f32 %v97_v33, %v87_v1  ;;  %v112_v31 = vmul.f32 %v101_v34, %v87_v1  ;;  %v113_v39 = vmul.f32 %v105_v35, %v87_v1 }
  0x83   :  { %v70_v19 = vmul.f32 %v53_v36, %v47_v2  ;;  %v71_v24 = vmul.f32 %v57_v37, %v47_v2  ;;  %v72_v25 = vmul.f32 %v61_v41, %v47_v2  ;;  %v73_v26 = vmul.f32 %v65_v42, %v47_v2 }
  0x84   :  { %v412_v32 = vrot.slane %v764_v18, %v637_v20  ;;  %v416_v33 = vrot.slane %v764_v18, %v639_v21  ;;  %v420_v34 = vrot.slane %v764_v18, %v641_v22  ;;  %v424_v35 = vrot.slane %v764_v18, %v643_v23 }
  0x85   :  { %v128_v27 = vpop.permute.xlu1 %127 }
  0x86   :  { %v77_v28 = vpop.permute.xlu0 %76  ;;  %v151_v16 = vmul.f32 %v134_v43, %v128_v27  ;;  %v152_v15 = vmul.f32 %v138_v46, %v128_v27  ;;  %v153_v14 = vmul.f32 %v142_v47, %v128_v27  ;;  %v154_v17 = vmul.f32 %v146_v48, %v128_v27 }
  0x87   :  { %v79_v40 = vadd.f32 %v77_v28, %v70_v19  ;;  %v80_v44 = vadd.f32 %v77_v28, %v71_v24  ;;  %v81_v50 = vadd.f32 %v77_v28, %v72_v25  ;;  %v82_v51 = vadd.f32 %v77_v28, %v73_v26 }
  0x89   :  { %v114_v63 = vadd.f32 %v110_v29, %v79_v40  ;;  %v115_v0 = vadd.f32 %v111_v30, %v80_v44  ;;  %v116_v36 = vadd.f32 %v112_v31, %v81_v50  ;;  %v117_v37 = vadd.f32 %v113_v39, %v82_v51  ;;  %v208_v41 = vpop.permute.xlu1 %207 }
  0x8a   :  { %v163_v42 = vpop.permute.xlu0 %162  ;;  %v231_v25 = vmul.f32 %v214_v52, %v208_v41  ;;  %v232_v26 = vmul.f32 %v218_v53, %v208_v41  ;;  %v233_v18 = vmul.f32 %v222_v54, %v208_v41  ;;  %v864_v40 = vrot.slane %v727_v60, %v637_v20 }
  0x8b   :  { %v155_v43 = vadd.f32 %v151_v16, %v114_v63  ;;  %v156_v46 = vadd.f32 %v152_v15, %v115_v0  ;;  %v157_v47 = vadd.f32 %v153_v14, %v116_v36  ;;  %v158_v48 = vadd.f32 %v154_v17, %v117_v37 }
  0x8c   :  { %v186_v1 = vmul.f32 %v169_v61, %v163_v42  ;;  %v187_v2 = vmul.f32 %v173_v3, %v163_v42  ;;  %v188_v19 = vmul.f32 %v177_v4, %v163_v42  ;;  %v189_v24 = vmul.f32 %v181_v5, %v163_v42 }
  0x8d   :  { %v234_v14 = vmul.f32 %v226_v55, %v208_v41  ;;  %v289_v61 = vpop.permute.xlu1 %288  ;;  %v865_v44 = vrot.slane %v727_v60, %v639_v21  ;;  %v866_v50 = vrot.slane %v727_v60, %v641_v22 }
  0x8e   :  { %v244_v3 = vpop.permute.xlu0 %243  ;;  %v190_v4 = vadd.f32 %v186_v1, %v155_v43  ;;  %v191_v5 = vadd.f32 %v187_v2, %v156_v46  ;;  %v192_v15 = vadd.f32 %v188_v19, %v157_v47  ;;  %v193_v16 = vadd.f32 %v189_v24, %v158_v48 }
  0x8f   :  { %v312_v52 = vmul.f32 %v295_v56, %v289_v61  ;;  %v313_v53 = vmul.f32 %v299_v57, %v289_v61  ;;  %v314_v54 = vmul.f32 %v303_v58, %v289_v61  ;;  %v315_v38 = vmul.f32 %v307_v62, %v289_v61 }
  0x90   :  { %v235_v55 = vadd.f32 %v231_v25, %v190_v4  ;;  %v236_v17 = vadd.f32 %v232_v26, %v191_v5  ;;  %v237_v27 = vadd.f32 %v233_v18, %v192_v15  ;;  %v238_v28 = vadd.f32 %v234_v14, %v193_v16  ;;  %v437_v26 = vld [vmem:[%s853_s1] sm:$0xff] }
  0x91   :  { %v267_v56 = vmul.f32 %v250_v6, %v244_v3  ;;  %v268_v57 = vmul.f32 %v254_v7, %v244_v3  ;;  %v269_v58 = vmul.f32 %v258_v8, %v244_v3  ;;  %v270_v45 = vmul.f32 %v262_v9, %v244_v3  ;;  %v370_v62 = vpop.permute.xlu1 %369 }
  0x92   :  { %v325_v29 = vpop.permute.xlu0 %324  ;;  %v393_v30 = vmul.f32 %v376_v10, %v370_v62  ;;  %v394_v6 = vmul.f32 %v380_v11, %v370_v62  ;;  %v395_v7 = vmul.f32 %v384_v12, %v370_v62  ;;  %v396_v8 = vmul.f32 %v388_v13, %v370_v62 }
  0x93   :  { %v271_v49 = vadd.f32 %v267_v56, %v235_v55  ;;  %v272_v9 = vadd.f32 %v268_v57, %v236_v17  ;;  %v273_v31 = vadd.f32 %v269_v58, %v237_v27  ;;  %v274_v39 = vadd.f32 %v270_v45, %v238_v28 }
  0x94   :  { %v348_v10 = vmul.f32 %v864_v40, %v325_v29  ;;  %v349_v11 = vmul.f32 %v865_v44, %v325_v29  ;;  %v350_v12 = vmul.f32 %v866_v50, %v325_v29  ;;  %v351_v13 = vmul.f32 %v867_v59, %v325_v29 }
  0x95   :  { %v316_v51 = vadd.f32 %v312_v52, %v271_v49  ;;  %v317_v63 = vadd.f32 %v313_v53, %v272_v9  ;;  %v318_v0 = vadd.f32 %v314_v54, %v273_v31  ;;  %v319_v36 = vadd.f32 %v315_v38, %v274_v39 }
  0x96   :  { %v406_v37 = vpop.permute.xlu0 %405 }
  0x97   :  { %v429_v41 = vmul.f32 %v412_v32, %v406_v37  ;;  %v430_v20 = vmul.f32 %v416_v33, %v406_v37  ;;  %v431_v42 = vmul.f32 %v420_v34, %v406_v37  ;;  %v432_v43 = vmul.f32 %v424_v35, %v406_v37  ;;  %v438_v32 = vld [vmem:[%s853_s1 + $0x8] sm:$0xff] }
  0x98   :  { %v352_v46 = vadd.f32 %v348_v10, %v316_v51  ;;  %v353_v21 = vadd.f32 %v349_v11, %v317_v63  ;;  %v354_v47 = vadd.f32 %v350_v12, %v318_v0  ;;  %v355_v48 = vadd.f32 %v351_v13, %v319_v36 }
  0x9a   :  { %v397_v1 = vadd.f32 %v393_v30, %v352_v46  ;;  %v398_v22 = vadd.f32 %v394_v6, %v353_v21  ;;  %v399_v2 = vadd.f32 %v395_v7, %v354_v47  ;;  %v400_v19 = vadd.f32 %v396_v8, %v355_v48 }
  0x9c   :  { %v433_v24 = vadd.f32 %v429_v41, %v397_v1  ;;  %v434_v23 = vadd.f32 %v430_v20, %v398_v22  ;;  %v435_v60 = vadd.f32 %v431_v42, %v399_v2  ;;  %v436_v25 = vadd.f32 %v432_v43, %v400_v19 }
  0x9e   :  { %v443_v33 = vcombine.low %v433_v24, %v434_v23  ;;  %v444_v34 = vcombine.low %v435_v60, %v436_v25 }
  0xa0   :  { %v447_v35 = vsub.f32 %v437_v26, %v443_v33  ;;  %v448_v18 = vsub.f32 %v438_v32, %v444_v34 }
  0xa2   :  { %v449_v14 = vand.u32 2147483647, %v447_v35  ;;  %v450_v61 = vand.u32 2147483647, %v448_v18 }
  0xa4   :  { %v453_v3 = vcombine.high %v449_v14, %v449_v14  ;;  %v454_v4 = vcombine.high %v450_v61, %v450_v61  ;;  %v458_v5 = vsel %vm457_vm0, %v449_v14, 0.0  ;;  %v461_v52 = vsel %vm457_vm0, %v450_v61, 0.0 }
  0xa6   :  { %v459_v15 = vsel %vm457_vm0, %v453_v3, 0.0  ;;  %v463_v54 = vsel %vm457_vm0, %v454_v4, 0.0 }
  0xa7   :  { %v460_v16 = vadd.f32 %v459_v15, %v458_v5 }
  0xa9   :  { %v462_v53 = vadd.f32 %v461_v52, %v460_v16 }
  0xab   :  { %v464_v38 = vadd.f32 %v463_v54, %v462_v53 }
  0xad   :  { %465 = vadd.xlane.f32.xlu1 %v464_v38 }
 0x13a   :  { %v466_v55 = vpop.xlane.xlu1 %465 }
 0x13b   :  { %v467_v17 = vrot.slane %v466_v55, 4 }
 0x13d   :  { %v468_v27 = vadd.f32 %v467_v17, %v466_v55 }
 0x13f   :  { %v469_v28 = vrot.slane %v468_v27, 2 }
 0x141   :  { %v470_v56 = vadd.f32 %v469_v28, %v468_v27 }
 0x143   :  { %v471_v57 = vrot.slane %v470_v56, 1 }
 0x145   :  { %v472_v58 = vadd.f32 %v471_v57, %v470_v56 }
 0x147   :  { %504 = vpush %v472_v58 }
 0x178   :  { %s505_s1 = spop %504 }
 0x179   :  { %475 = sst [smem:[#allocation2]] %s505_s1 }
 0x17a   :  { %519 = shalt.err (!%p516_p2)
}
 0x17b   :  { %s523_s5 = smov [#allocation2]  }
 0x17c   :  { %483 = dma.smem_to_hbm %s523_s5, 16, %s863_s11, [#allocation3]  }
 0x17d   :  { %520 = dma.done.wait [#allocation3], 16  }
 0x17e   :  { %521 = vsyncadd [#allocation3], 4294967280 }
 0x17f   :  { %487 = sfence }
 0x180   :  { %488 = vsyncpa [#allocation3], 1 }

</bundles_post_ra>
